<compile_context>
chip_gen: v7x
topology: tpu7x:2x2x1
jax: 0.10.0
libtpu: 0.0.40
codegen_flags: <defaults>
</compile_context>

<pallas_src>
import functools

import jax
import jax.numpy as jnp
import numpy as np
from jax.experimental import pallas as pl
from jax.experimental.pallas import tpu as pltpu


def _round_up(x, m):
    return (x + m - 1) // m * m


def _dc_kernel(x_ref, ksp_ref, mask_ref, fh2_ref, fw2_ref, fw2v_ref, o_ref):
    """One grid step = `tb` images; 2*tb + 2 MXU matmuls, no VMEM scratch."""
    f32 = jnp.float32
    tb, H, Wp = x_ref.shape
    cdt = fh2_ref.dtype                        # matmul-operand dtype (f32 or bf16)

    m = mask_ref[...]                          # (H, Wp)   undersampling mask
    fh2 = fh2_ref[...]                         # (2H, H)   [Re F_H ; Im F_H]
    fw2 = fw2_ref[...]                         # (Wp, 2Wp) [Re F_W | Im F_W]
    fw2v = fw2v_ref[...]                       # (2Wp, Wp) [Re F_W ; Im F_W]

    # ---- forward W-side DFT, batch-folded (M = tb*H):  X @ [Fwr | Fwi] -------
    x2 = x_ref[...].reshape(tb * H, Wp)                              # layout-free reshape
    p = jnp.dot(x2.astype(cdt), fw2, preferred_element_type=f32)     # (tb*H, 2Wp)

    v_rows = []
    for b in range(tb):                        # per-image H-side stages (M=2H, N=2Wp)
        pb = p[b * H:(b + 1) * H, :]                                 # (H, 2Wp) = [Yr | Yi]

        # forward H-side:  Kpred = F_H @ (x @ F_W)
        q = jnp.dot(fh2, pb.astype(cdt), preferred_element_type=f32)  # (2H, 2Wp)
        kpr = q[:H, :Wp] - q[H:, Wp:]                                # Re Kpred
        kpi = q[:H, Wp:] + q[H:, :Wp]                                # Im Kpred

        # data consistency:  U = m*Kmeas + (1-m)*Kpred   (one mul per element)
        ur = kpr + m * (ksp_ref[b, 0] - kpr)
        ui = kpi + m * (ksp_ref[b, 1] - kpi)
        u = jnp.concatenate([ur, ui], axis=-1)                       # (H, 2Wp) = [Ur | Ui]

        # inverse H-side:  V = conj(F_H) @ U
        r = jnp.dot(fh2, u.astype(cdt), preferred_element_type=f32)  # (2H, 2Wp)
        vr = r[:H, :Wp] + r[H:, Wp:]
        vi = r[:H, Wp:] - r[H:, :Wp]
        v_rows.append(jnp.concatenate([vr, vi], axis=-1))            # (H, 2Wp) = [Vr | Vi]

    # ---- inverse W-side DFT (real part), batch-folded:  [Vr|Vi] @ [Fwr ; Fwi] -
    v = jnp.concatenate(v_rows, axis=0)                              # (tb*H, 2Wp)
    img = jnp.dot(v.astype(cdt), fw2v, preferred_element_type=f32)   # (tb*H, Wp)
    o_ref[...] = img.reshape(tb, H, Wp).astype(o_ref.dtype)


@functools.lru_cache(maxsize=None)
def _dft_matrices(H, W, Hp, Wp, dtype_name):
    """Unitary DFT matrices, zero-embedded to padded sizes and pre-concatenated
    for fused complex matmuls (cached per shape/dtype)."""
    dt = jnp.dtype(dtype_name)
    nh = np.arange(H)
    nw = np.arange(W)
    ang_h = -2.0 * np.pi * np.outer(nh, nh) / H
    ang_w = -2.0 * np.pi * np.outer(nw, nw) / W
    fhr = np.zeros((Hp, Hp), np.float64); fhr[:H, :H] = np.cos(ang_h) / np.sqrt(H)
    fhi = np.zeros((Hp, Hp), np.float64); fhi[:H, :H] = np.sin(ang_h) / np.sqrt(H)
    fwr = np.zeros((Wp, Wp), np.float64); fwr[:W, :W] = np.cos(ang_w) / np.sqrt(W)
    fwi = np.zeros((Wp, Wp), np.float64); fwi[:W, :W] = np.sin(ang_w) / np.sqrt(W)
    fh2 = np.concatenate([fhr, fhi], axis=0)    # (2Hp, Hp)
    fw2 = np.concatenate([fwr, fwi], axis=1)    # (Wp, 2Wp)
    fw2v = np.concatenate([fwr, fwi], axis=0)   # (2Wp, Wp)
    return (jnp.asarray(fh2, dt), jnp.asarray(fw2, dt), jnp.asarray(fw2v, dt))


def _hw_info():
    """(physical VMEM bytes, is_two_tensorcore_chip) -- best effort, safe fallbacks."""
    vmem = 128 * 1024 * 1024
    try:
        vmem = int(pltpu.get_tpu_info().vmem_capacity_bytes)
    except Exception:
        pass
    kind = ""
    try:
        kind = jax.devices()[0].device_kind.lower()
    except Exception:
        pass
    two_tc = ("v7" in kind) or ("7x" in kind)
    return vmem, two_tc


def _vmem_budget(vmem_bytes, two_tc):
    if two_tc:
        # v7x: 64 MiB physical VMEM per TensorCore -> leave headroom (cap ~48 MiB).
        return min(int(0.75 * vmem_bytes), 48 * 1024 * 1024)
    # Single-TC chips (v5e/v6e, 128 MiB physical): grow toward ~96 MiB.
    return min(int(0.75 * vmem_bytes), 96 * 1024 * 1024)


def _footprint_bytes(tb, Hp, Wp):
    """Rough per-grid-step VMEM footprint (f32, conservative)."""
    f = 4
    const = 2 * f * (Hp * Wp + 2 * Hp * Hp + 4 * Wp * Wp)   # mask + fh2 + fw2 + fw2v (pipeline bufs)
    tiles = 2 * f * tb * Hp * Wp * 4                        # double-buffered x + ksp(re,im) + out
    temps = f * (4 * tb * Hp * Wp + 16 * Hp * Wp)           # P/V stacks + per-image temporaries
    return const + tiles + temps + (6 << 20)                # compiler-internal scratch headroom


def _pick_batch_tile(B, Hp, Wp, budget, two_tc):
    cap = min(B, 8)                                 # bound the static unroll / compile time
    if two_tc and B >= 2:
        cap = min(cap, max(1, (B + 1) // 2))        # keep >= 2 grid steps so both TCs get work
    tb = 1
    for cand in range(1, cap + 1):
        if _footprint_bytes(cand, Hp, Wp) <= budget:
            tb = cand
    return tb


def data_consistency_layer(predicted_img, us_kspace, us_mask, *, precision="f32"):
    """predicted_img: [B,1,H,W], us_kspace: [B,1,H,W,2], us_mask: [H,W] (0/1).
    Returns [B,1,H,W] float32.  precision="bf16" enables bf16 MXU operands
    (f32 accumulation) at ~1e-2..1e-3 relative error."""
    B, _, H, W = predicted_img.shape
    Hp = _round_up(H, 8)
    Wp = _round_up(W, 128)

    # Layout-only glue (no math): drop channel dim; move the k-space (re, im)
    # axis next to batch once.
    x = predicted_img[:, 0].astype(jnp.float32)                       # [B, H, W]
    ksp = jnp.moveaxis(us_kspace[:, 0].astype(jnp.float32), -1, 1)    # [B, 2, H, W]
    mask = us_mask.astype(jnp.float32)                                # [H, W]

    if (Hp, Wp) != (H, W):     # lane/sublane pad with zeros (DFT matrices are zero-embedded)
        x = jnp.pad(x, ((0, 0), (0, Hp - H), (0, Wp - W)))
        ksp = jnp.pad(ksp, ((0, 0), (0, 0), (0, Hp - H), (0, Wp - W)))
        mask = jnp.pad(mask, ((0, Hp - H), (0, Wp - W)))

    cdt = jnp.bfloat16 if precision == "bf16" else jnp.float32
    fh2, fw2, fw2v = _dft_matrices(H, W, Hp, Wp, jnp.dtype(cdt).name)

    vmem_bytes, two_tc = _hw_info()
    budget = _vmem_budget(vmem_bytes, two_tc)
    tb = _pick_batch_tile(B, Hp, Wp, budget, two_tc)
    nblk = -(-B // tb)
    b_pad = nblk * tb
    if b_pad != B:             # pad batch to the tile (padded rows are computed then discarded)
        x = jnp.pad(x, ((0, b_pad - B), (0, 0), (0, 0)))
        ksp = jnp.pad(ksp, ((0, b_pad - B), (0, 0), (0, 0), (0, 0)))

    out = pl.pallas_call(
        _dc_kernel,
        out_shape=jax.ShapeDtypeStruct((b_pad, Hp, Wp), jnp.float32),
        grid_spec=pltpu.PrefetchScalarGridSpec(
            num_scalar_prefetch=0,
            grid=(nblk,),
            in_specs=[
                pl.BlockSpec((tb, Hp, Wp), lambda i: (i, 0, 0)),        # predicted image tile
                pl.BlockSpec((tb, 2, Hp, Wp), lambda i: (i, 0, 0, 0)),  # measured k-space (re/im)
                pl.BlockSpec((Hp, Wp), lambda i: (0, 0)),               # mask (resident)
                pl.BlockSpec((2 * Hp, Hp), lambda i: (0, 0)),           # [Re;Im] F_H
                pl.BlockSpec((Wp, 2 * Wp), lambda i: (0, 0)),           # [Re|Im] F_W
                pl.BlockSpec((2 * Wp, Wp), lambda i: (0, 0)),           # [Re;Im] F_W
            ],
            out_specs=pl.BlockSpec((tb, Hp, Wp), lambda i: (i, 0, 0)),
        ),
        compiler_params=pltpu.CompilerParams(
            dimension_semantics=("parallel",),
            vmem_limit_bytes=budget,
        ),
    )(x, ksp, mask, fh2, fw2, fw2v)

    return out[:B, None, :H, :W]                                        # [B, 1, H, W]


def _reference(predicted_img, us_kspace, us_mask):
    """Pure-JAX reference mirroring the PyTorch forward (ortho-normalized FFTs)."""
    x = predicted_img[:, 0]
    kpred = jnp.fft.fft2(x, norm="ortho")
    usk = us_kspace[:, 0, :, :, 0] + 1j * us_kspace[:, 0, :, :, 1]
    upd = us_mask * usk + (1.0 - us_mask) * kpred
    img = jnp.fft.ifft2(upd, norm="ortho")
    return jnp.real(img)[:, None, :, :].astype(jnp.float32)


if __name__ == "__main__":
    B, H, W = 2, 16, 16
    key = jax.random.PRNGKey(0)
    k1, k2, k3 = jax.random.split(key, 3)

    predicted_img = jax.random.normal(k1, (B, 1, H, W), dtype=jnp.float32)
    us_kspace = jax.random.normal(k2, (B, 1, H, W, 2), dtype=jnp.float32)
    # Deterministic 0/1 undersampling mask.
    us_mask = jax.random.bernoulli(k3, p=0.3, shape=(H, W)).astype(jnp.float32)

    out = data_consistency_layer(predicted_img, us_kspace, us_mask)
    out = jax.block_until_ready(out)

    ref = jax.block_until_ready(_reference(predicted_img, us_kspace, us_mask))
    np.testing.assert_allclose(np.asarray(out), np.asarray(ref), atol=2e-4, rtol=2e-4)

    assert out.shape == (B, 1, H, W) and out.dtype == jnp.float32
    print("KERNEL_OK")
</pallas_src>

<mosaic_0001>
module attributes {stable_mosaic.version = 11 : i64} {
  func.func @_dc_kernel(%arg0: i32, %arg1: memref<2x16x128xf32, #tpu.memory_space<vmem>>, %arg2: memref<2x2x16x128xf32, #tpu.memory_space<vmem>>, %arg3: memref<16x128xf32, #tpu.memory_space<vmem>>, %arg4: memref<32x16xf32, #tpu.memory_space<vmem>>, %arg5: memref<128x256xf32, #tpu.memory_space<vmem>>, %arg6: memref<256x128xf32, #tpu.memory_space<vmem>>, %arg7: memref<2x16x128xf32, #tpu.memory_space<vmem>>) attributes {dimension_semantics = [#tpu.dimension_semantics<parallel>], iteration_bounds = array<i64: 1>, scalar_prefetch = 0 : i64, scratch_operands = 0 : i64, tpu.core_type = #tpu.core_type<tc>, window_params = [{transform_indices = @transform_0, window_bounds = array<i64: 2, 16, 128>}, {transform_indices = @transform_1, window_bounds = array<i64: 2, 2, 16, 128>}, {pipeline_mode = #tpu.pipeline_mode<synchronous>, transform_indices = @transform_2, window_bounds = array<i64: 16, 128>}, {pipeline_mode = #tpu.pipeline_mode<synchronous>, transform_indices = @transform_3, window_bounds = array<i64: 32, 16>}, {pipeline_mode = #tpu.pipeline_mode<synchronous>, transform_indices = @transform_4, window_bounds = array<i64: 128, 256>}, {pipeline_mode = #tpu.pipeline_mode<synchronous>, transform_indices = @transform_5, window_bounds = array<i64: 256, 128>}, {transform_indices = @transform_6, window_bounds = array<i64: 2, 16, 128>}]} {
    %c0 = arith.constant 0 : index
    %c0_0 = arith.constant 0 : index
    %0 = vector.load %arg3[%c0, %c0_0] : memref<16x128xf32, #tpu.memory_space<vmem>>, vector<16x128xf32>
    %c0_1 = arith.constant 0 : index
    %c0_2 = arith.constant 0 : index
    %1 = vector.load %arg4[%c0_1, %c0_2] : memref<32x16xf32, #tpu.memory_space<vmem>>, vector<32x16xf32>
    %c0_3 = arith.constant 0 : index
    %c0_4 = arith.constant 0 : index
    %2 = vector.load %arg5[%c0_3, %c0_4] : memref<128x256xf32, #tpu.memory_space<vmem>>, vector<128x256xf32>
    %c0_5 = arith.constant 0 : index
    %c0_6 = arith.constant 0 : index
    %3 = vector.load %arg6[%c0_5, %c0_6] : memref<256x128xf32, #tpu.memory_space<vmem>>, vector<256x128xf32>
    %c0_7 = arith.constant 0 : index
    %c0_8 = arith.constant 0 : index
    %c0_9 = arith.constant 0 : index
    %4 = vector.load %arg1[%c0_7, %c0_8, %c0_9] : memref<2x16x128xf32, #tpu.memory_space<vmem>>, vector<2x16x128xf32>
    %5 = vector.shape_cast %4 : vector<2x16x128xf32> to vector<32x128xf32>
    %cst = arith.constant dense<0.000000e+00> : vector<32x256xf32>
    %6 = tpu.matmul %5, %2, %cst {dimension_numbers = #tpu.dot_dimension_numbers<[1], [0], [0], [1], [0, 0, 1, 1], [], []>} : vector<32x128xf32>, vector<128x256xf32>, vector<32x256xf32> -> vector<32x256xf32>
    %7 = vector.extract_strided_slice %6 {offsets = [0, 0], sizes = [16, 256], strides = [1, 1]} : vector<32x256xf32> to vector<16x256xf32>
    %cst_10 = arith.constant dense<0.000000e+00> : vector<32x256xf32>
    %8 = tpu.matmul %1, %7, %cst_10 {dimension_numbers = #tpu.dot_dimension_numbers<[1], [0], [0], [1], [0, 0, 1, 1], [], []>} : vector<32x16xf32>, vector<16x256xf32>, vector<32x256xf32> -> vector<32x256xf32>
    %9 = vector.extract_strided_slice %8 {offsets = [0, 0], sizes = [16, 128], strides = [1, 1]} : vector<32x256xf32> to vector<16x128xf32>
    %10 = vector.extract_strided_slice %8 {offsets = [16, 128], sizes = [16, 128], strides = [1, 1]} : vector<32x256xf32> to vector<16x128xf32>
    %11 = arith.subf %9, %10 : vector<16x128xf32>
    %12 = vector.extract_strided_slice %8 {offsets = [0, 128], sizes = [16, 128], strides = [1, 1]} : vector<32x256xf32> to vector<16x128xf32>
    %13 = vector.extract_strided_slice %8 {offsets = [16, 0], sizes = [16, 128], strides = [1, 1]} : vector<32x256xf32> to vector<16x128xf32>
    %14 = arith.addf %12, %13 : vector<16x128xf32>
    %c0_11 = arith.constant 0 : index
    %c0_12 = arith.constant 0 : index
    %c0_13 = arith.constant 0 : index
    %c0_14 = arith.constant 0 : index
    %15 = vector.load %arg2[%c0_11, %c0_12, %c0_13, %c0_14] : memref<2x2x16x128xf32, #tpu.memory_space<vmem>>, vector<1x1x16x128xf32>
    %16 = vector.shape_cast %15 : vector<1x1x16x128xf32> to vector<16x128xf32>
    %17 = arith.subf %16, %11 : vector<16x128xf32>
    %18 = arith.mulf %0, %17 : vector<16x128xf32>
    %19 = arith.addf %11, %18 : vector<16x128xf32>
    %c0_15 = arith.constant 0 : index
    %c1 = arith.constant 1 : index
    %c0_16 = arith.constant 0 : index
    %c0_17 = arith.constant 0 : index
    %20 = vector.load %arg2[%c0_15, %c1, %c0_16, %c0_17] : memref<2x2x16x128xf32, #tpu.memory_space<vmem>>, vector<1x1x16x128xf32>
    %21 = vector.shape_cast %20 : vector<1x1x16x128xf32> to vector<16x128xf32>
    %22 = arith.subf %21, %14 : vector<16x128xf32>
    %23 = arith.mulf %0, %22 : vector<16x128xf32>
    %24 = arith.addf %14, %23 : vector<16x128xf32>
    %25 = tpu.concatenate %19, %24 in 1 : vector<16x128xf32>, vector<16x128xf32> -> vector<16x256xf32>
    %cst_18 = arith.constant dense<0.000000e+00> : vector<32x256xf32>
    %26 = tpu.matmul %1, %25, %cst_18 {dimension_numbers = #tpu.dot_dimension_numbers<[1], [0], [0], [1], [0, 0, 1, 1], [], []>} : vector<32x16xf32>, vector<16x256xf32>, vector<32x256xf32> -> vector<32x256xf32>
    %27 = vector.extract_strided_slice %26 {offsets = [0, 0], sizes = [16, 128], strides = [1, 1]} : vector<32x256xf32> to vector<16x128xf32>
    %28 = vector.extract_strided_slice %26 {offsets = [16, 128], sizes = [16, 128], strides = [1, 1]} : vector<32x256xf32> to vector<16x128xf32>
    %29 = arith.addf %27, %28 : vector<16x128xf32>
    %30 = vector.extract_strided_slice %26 {offsets = [0, 128], sizes = [16, 128], strides = [1, 1]} : vector<32x256xf32> to vector<16x128xf32>
    %31 = vector.extract_strided_slice %26 {offsets = [16, 0], sizes = [16, 128], strides = [1, 1]} : vector<32x256xf32> to vector<16x128xf32>
    %32 = arith.subf %30, %31 : vector<16x128xf32>
    %33 = tpu.concatenate %29, %32 in 1 : vector<16x128xf32>, vector<16x128xf32> -> vector<16x256xf32>
    %34 = vector.extract_strided_slice %6 {offsets = [16, 0], sizes = [16, 256], strides = [1, 1]} : vector<32x256xf32> to vector<16x256xf32>
    %cst_19 = arith.constant dense<0.000000e+00> : vector<32x256xf32>
    %35 = tpu.matmul %1, %34, %cst_19 {dimension_numbers = #tpu.dot_dimension_numbers<[1], [0], [0], [1], [0, 0, 1, 1], [], []>} : vector<32x16xf32>, vector<16x256xf32>, vector<32x256xf32> -> vector<32x256xf32>
    %36 = vector.extract_strided_slice %35 {offsets = [0, 0], sizes = [16, 128], strides = [1, 1]} : vector<32x256xf32> to vector<16x128xf32>
    %37 = vector.extract_strided_slice %35 {offsets = [16, 128], sizes = [16, 128], strides = [1, 1]} : vector<32x256xf32> to vector<16x128xf32>
    %38 = arith.subf %36, %37 : vector<16x128xf32>
    %39 = vector.extract_strided_slice %35 {offsets = [0, 128], sizes = [16, 128], strides = [1, 1]} : vector<32x256xf32> to vector<16x128xf32>
    %40 = vector.extract_strided_slice %35 {offsets = [16, 0], sizes = [16, 128], strides = [1, 1]} : vector<32x256xf32> to vector<16x128xf32>
    %41 = arith.addf %39, %40 : vector<16x128xf32>
    %c1_20 = arith.constant 1 : index
    %c0_21 = arith.constant 0 : index
    %c0_22 = arith.constant 0 : index
    %c0_23 = arith.constant 0 : index
    %42 = vector.load %arg2[%c1_20, %c0_21, %c0_22, %c0_23] : memref<2x2x16x128xf32, #tpu.memory_space<vmem>>, vector<1x1x16x128xf32>
    %43 = vector.shape_cast %42 : vector<1x1x16x128xf32> to vector<16x128xf32>
    %44 = arith.subf %43, %38 : vector<16x128xf32>
    %45 = arith.mulf %0, %44 : vector<16x128xf32>
    %46 = arith.addf %38, %45 : vector<16x128xf32>
    %c1_24 = arith.constant 1 : index
    %c1_25 = arith.constant 1 : index
    %c0_26 = arith.constant 0 : index
    %c0_27 = arith.constant 0 : index
    %47 = vector.load %arg2[%c1_24, %c1_25, %c0_26, %c0_27] : memref<2x2x16x128xf32, #tpu.memory_space<vmem>>, vector<1x1x16x128xf32>
    %48 = vector.shape_cast %47 : vector<1x1x16x128xf32> to vector<16x128xf32>
    %49 = arith.subf %48, %41 : vector<16x128xf32>
    %50 = arith.mulf %0, %49 : vector<16x128xf32>
    %51 = arith.addf %41, %50 : vector<16x128xf32>
    %52 = tpu.concatenate %46, %51 in 1 : vector<16x128xf32>, vector<16x128xf32> -> vector<16x256xf32>
    %cst_28 = arith.constant dense<0.000000e+00> : vector<32x256xf32>
    %53 = tpu.matmul %1, %52, %cst_28 {dimension_numbers = #tpu.dot_dimension_numbers<[1], [0], [0], [1], [0, 0, 1, 1], [], []>} : vector<32x16xf32>, vector<16x256xf32>, vector<32x256xf32> -> vector<32x256xf32>
    %54 = vector.extract_strided_slice %53 {offsets = [0, 0], sizes = [16, 128], strides = [1, 1]} : vector<32x256xf32> to vector<16x128xf32>
    %55 = vector.extract_strided_slice %53 {offsets = [16, 128], sizes = [16, 128], strides = [1, 1]} : vector<32x256xf32> to vector<16x128xf32>
    %56 = arith.addf %54, %55 : vector<16x128xf32>
    %57 = vector.extract_strided_slice %53 {offsets = [0, 128], sizes = [16, 128], strides = [1, 1]} : vector<32x256xf32> to vector<16x128xf32>
    %58 = vector.extract_strided_slice %53 {offsets = [16, 0], sizes = [16, 128], strides = [1, 1]} : vector<32x256xf32> to vector<16x128xf32>
    %59 = arith.subf %57, %58 : vector<16x128xf32>
    %60 = tpu.concatenate %56, %59 in 1 : vector<16x128xf32>, vector<16x128xf32> -> vector<16x256xf32>
    %61 = tpu.concatenate %33, %60 in 0 : vector<16x256xf32>, vector<16x256xf32> -> vector<32x256xf32>
    %cst_29 = arith.constant dense<0.000000e+00> : vector<32x128xf32>
    %62 = tpu.matmul %61, %3, %cst_29 {dimension_numbers = #tpu.dot_dimension_numbers<[1], [0], [0], [1], [0, 0, 1, 1], [], []>} : vector<32x256xf32>, vector<256x128xf32>, vector<32x128xf32> -> vector<32x128xf32>
    %63 = vector.shape_cast %62 : vector<32x128xf32> to vector<2x16x128xf32>
    %c0_30 = arith.constant 0 : index
    %c0_31 = arith.constant 0 : index
    %c0_32 = arith.constant 0 : index
    %64 = vector.load %arg7[%c0_30, %c0_31, %c0_32] : memref<2x16x128xf32, #tpu.memory_space<vmem>>, vector<2x16x128xf32>
    tpu.vector_store %arg7[%c0_30, %c0_31, %c0_32], %63 {strides = array<i32>} : memref<2x16x128xf32, #tpu.memory_space<vmem>>, vector<2x16x128xf32>,
    return
  }
  func.func @transform_0(%arg0: i32) -> (i32, i32, i32) {
    %c0_i32 = arith.constant 0 : i32
    %c0_i32_0 = arith.constant 0 : i32
    %c0_i32_1 = arith.constant 0 : i32
    return %arg0, %c0_i32, %c0_i32_0 : i32, i32, i32
  }
  func.func @transform_1(%arg0: i32) -> (i32, i32, i32, i32) {
    %c0_i32 = arith.constant 0 : i32
    %c0_i32_0 = arith.constant 0 : i32
    %c0_i32_1 = arith.constant 0 : i32
    %c0_i32_2 = arith.constant 0 : i32
    return %arg0, %c0_i32, %c0_i32_0, %c0_i32_1 : i32, i32, i32, i32
  }
  func.func @transform_2(%arg0: i32) -> (i32, i32) {
    %c0_i32 = arith.constant 0 : i32
    %c0_i32_0 = arith.constant 0 : i32
    %c0_i32_1 = arith.constant 0 : i32
    return %c0_i32, %c0_i32_0 : i32, i32
  }
  func.func @transform_3(%arg0: i32) -> (i32, i32) {
    %c0_i32 = arith.constant 0 : i32
    %c0_i32_0 = arith.constant 0 : i32
    %c0_i32_1 = arith.constant 0 : i32
    return %c0_i32, %c0_i32_0 : i32, i32
  }
  func.func @transform_4(%arg0: i32) -> (i32, i32) {
    %c0_i32 = arith.constant 0 : i32
    %c0_i32_0 = arith.constant 0 : i32
    %c0_i32_1 = arith.constant 0 : i32
    return %c0_i32, %c0_i32_0 : i32, i32
  }
  func.func @transform_5(%arg0: i32) -> (i32, i32) {
    %c0_i32 = arith.constant 0 : i32
    %c0_i32_0 = arith.constant 0 : i32
    %c0_i32_1 = arith.constant 0 : i32
    return %c0_i32, %c0_i32_0 : i32, i32
  }
  func.func @transform_6(%arg0: i32) -> (i32, i32, i32) {
    %c0_i32 = arith.constant 0 : i32
    %c0_i32_0 = arith.constant 0 : i32
    %c0_i32_1 = arith.constant 0 : i32
    return %arg0, %c0_i32, %c0_i32_0 : i32, i32, i32
  }
}

</mosaic_0001>

<bundles_post_ra>
// kernel: tpu_custom_call.1
= control target key start
LH: loop header
LB: loop body
LE: loop exit
PB: predicated region body
PF: predicated region fallthrough
CT: control target
= control target key end

     0   :  { %11 = vsyncpa [#allocation3], 0  ;;  %s1351_s0 = inlined_call_operand.hbm [shape: f32[2,16,128], index: 0, kind: input, shape index: {}]   ;;  %s1352_s1 = inlined_call_operand.hbm [shape: f32[2,2,16,128], index: 1, kind: input, shape index: {}]   ;;  %s1353_s2 = inlined_call_operand.hbm [shape: f32[16,128], index: 2, kind: input, shape index: {}]   ;;  %s1354_s3 = inlined_call_operand.hbm [shape: f32[32,16], index: 3, kind: input, shape index: {}]   ;;  %s1355_s4 = inlined_call_operand.hbm [shape: f32[128,256], index: 4, kind: input, shape index: {}]   ;;  %s1356_s5 = inlined_call_operand.hbm [shape: f32[256,128], index: 5, kind: input, shape index: {}]   ;;  %s1357_s6 = inlined_call_operand.hbm [shape: f32[2,16,128], index: 6, kind: output, shape index: {}]  }
   0x1   :  { %12 = vsyncpa [#allocation6], 0 }
   0x2   :  { %13 = vsyncpa [#allocation9], 0 }
   0x3   :  { %14 = vsyncpa [#allocation12], 0 }
   0x4   :  { %15 = vsyncpa [#allocation4], 0  ;;  %s1116_s21 = smov [#allocation5]   ;;  %s1117_s23 = smov [#allocation8]  }
   0x5   :  { %s33_s22 = sshll.u32 %s1116_s21, 4  ;;  %s57_s24 = sshll.u32 %s1117_s23, 4  ;;  %s34_s22 = int_to_ptr.vmem [resolvable:$true] %s33_s22  ;;  %s1163_s24 = int_to_ptr.vmem [resolvable:$true] %s57_s24 }
   0x6   :  { %s952_s27 = scalar_lea.hbm %s1352_s1, 1024 }
   0x7   :  { %p953_p0 = scmp.ne.s32.totalorder %s1352_s1, %s952_s27  ;;  %p956_p1 = scmp.lt.u32.totalorder %s952_s27, %s1352_s1 }
   0x9   :  { %p958_p2 = pnand %p956_p1, %p953_p0 }
   0xb   :  { %961 = shalt.err (!%p958_p2)
}
   0xc   :  { %s962_s8 = scalar_lea.vmem %s34_s22, 1024  ;;  %p967_p4 = scmp.lt.s32.totalorder %s34_s22, %s34_s22 }
   0xd   :  { %p963_p3 = scmp.ne.s32.totalorder %s34_s22, %s962_s8  ;;  %p968_p5 = scmp.lt.s32.totalorder %s962_s8, %s962_s8 }
   0xf   :  { %p969_p6 = por %p968_p5, %p967_p4 }
  0x11   :  { %p970_p7 = pnand %p969_p6, %p963_p3 }
  0x13   :  { %973 = shalt.err (!%p970_p7)
}
  0x14   :  { %s1118_s9 = smov 128   ;;  %s1119_s10 = smov 8  }
  0x15   :  { %39 = dma.hbm_to_vmem [thread:$0]  %s1352_s1, 1024, %s34_s22, [#allocation6], %s1118_s9, %s1118_s9, %s1119_s10  }
  0x16   :  { %s974_s15 = scalar_lea.hbm %s1354_s3, 512 }
  0x17   :  { %p975_p8 = scmp.ne.s32.totalorder %s1354_s3, %s974_s15  ;;  %p978_p9 = scmp.lt.u32.totalorder %s974_s15, %s1354_s3 }
  0x19   :  { %p980_p10 = pnand %p978_p9, %p975_p8 }
  0x1b   :  { %983 = shalt.err (!%p980_p10)
}
  0x1c   :  { %s984_s20 = scalar_lea.vmem %s1163_s24, 512  ;;  %p989_p12 = scmp.lt.s32.totalorder %s1163_s24, %s1163_s24 }
  0x1d   :  { %p985_p11 = scmp.ne.s32.totalorder %s1163_s24, %s984_s20  ;;  %p990_p13 = scmp.lt.s32.totalorder %s984_s20, %s984_s20 }
  0x1f   :  { %p991_p0 = por %p990_p13, %p989_p12 }
  0x21   :  { %p992_p1 = pnand %p991_p0, %p985_p11 }
  0x23   :  { %995 = shalt.err (!%p992_p1)
}
  0x24   :  { %63 = dma.hbm_to_vmem [thread:$0]  %s1354_s3, 512, %s1163_s24, [#allocation9], %s1118_s9, %s1118_s9, %s1119_s10  }
  0x25   :  { %s1120_s22 = smov [#allocation2]   ;;  %s1121_s25 = smov [#allocation7]  }
  0x26   :  { %s21_s23 = sshll.u32 %s1120_s22, 4  ;;  %s45_s26 = sshll.u32 %s1121_s25, 4  ;;  %s22_s23 = int_to_ptr.vmem [resolvable:$true] %s21_s23  ;;  %s1200_s26 = int_to_ptr.vmem [resolvable:$true] %s45_s26 }
  0x27   :  { %s996_s29 = scalar_lea.hbm %s1351_s0, 512 }
  0x28   :  { %p997_p2 = scmp.ne.s32.totalorder %s1351_s0, %s996_s29  ;;  %p1000_p3 = scmp.lt.u32.totalorder %s996_s29, %s1351_s0 }
  0x2a   :  { %p1002_p4 = pnand %p1000_p3, %p997_p2 }
  0x2c   :  { %1005 = shalt.err (!%p1002_p4)
}
  0x2d   :  { %s1006_s3 = scalar_lea.vmem %s22_s23, 512  ;;  %p1011_p6 = scmp.lt.s32.totalorder %s22_s23, %s22_s23 }
  0x2e   :  { %p1007_p5 = scmp.ne.s32.totalorder %s22_s23, %s1006_s3  ;;  %p1012_p7 = scmp.lt.s32.totalorder %s1006_s3, %s1006_s3 }
  0x30   :  { %p1013_p8 = por %p1012_p7, %p1011_p6 }
  0x32   :  { %p1014_p9 = pnand %p1013_p8, %p1007_p5 }
  0x34   :  { %1017 = shalt.err (!%p1014_p9)
}
  0x35   :  { %27 = dma.hbm_to_vmem [thread:$0]  %s1351_s0, 512, %s22_s23, [#allocation3], %s1118_s9, %s1118_s9, %s1119_s10  }
  0x36   :  { %s1018_s15 = scalar_lea.hbm %s1353_s2, 256 }
  0x37   :  { %p1019_p10 = scmp.ne.s32.totalorder %s1353_s2, %s1018_s15  ;;  %p1022_p11 = scmp.lt.u32.totalorder %s1018_s15, %s1353_s2 }
  0x39   :  { %p1024_p12 = pnand %p1022_p11, %p1019_p10 }
  0x3b   :  { %1027 = shalt.err (!%p1024_p12)
}
  0x3c   :  { %s1028_s20 = scalar_lea.vmem %s1200_s26, 256  ;;  %p1033_p0 = scmp.lt.s32.totalorder %s1200_s26, %s1200_s26 }
  0x3d   :  { %p1029_p13 = scmp.ne.s32.totalorder %s1200_s26, %s1028_s20  ;;  %p1034_p1 = scmp.lt.s32.totalorder %s1028_s20, %s1028_s20 }
  0x3f   :  { %p1035_p2 = por %p1034_p1, %p1033_p0 }
  0x41   :  { %p1036_p3 = pnand %p1035_p2, %p1029_p13 }
  0x43   :  { %1039 = shalt.err (!%p1036_p3)
}
  0x44   :  { %51 = dma.hbm_to_vmem [thread:$0]  %s1353_s2, 256, %s1200_s26, [#allocation6], %s1118_s9, %s1118_s9, %s1119_s10  }
  0x45   :  { %s1122_s21 = smov [#allocation10]   ;;  %s1040_s27 = scalar_lea.hbm %s1355_s4, 4096 }
  0x46   :  { %s69_s22 = sshll.u32 %s1122_s21, 4  ;;  %p1041_p4 = scmp.ne.s32.totalorder %s1355_s4, %s1040_s27  ;;  %s70_s22 = int_to_ptr.vmem [resolvable:$true] %s69_s22 }
  0x47   :  { %p1044_p5 = scmp.lt.u32.totalorder %s1040_s27, %s1355_s4 }
  0x49   :  { %p1046_p6 = pnand %p1044_p5, %p1041_p4 }
  0x4b   :  { %1049 = shalt.err (!%p1046_p6)
}
  0x4c   :  { %s1050_s8 = scalar_lea.vmem %s70_s22, 4096  ;;  %p1055_p8 = scmp.lt.s32.totalorder %s70_s22, %s70_s22 }
  0x4d   :  { %p1051_p7 = scmp.ne.s32.totalorder %s70_s22, %s1050_s8  ;;  %p1056_p9 = scmp.lt.s32.totalorder %s1050_s8, %s1050_s8 }
  0x4f   :  { %p1057_p10 = por %p1056_p9, %p1055_p8 }
  0x51   :  { %p1058_p11 = pnand %p1057_p10, %p1051_p7 }
  0x53   :  { %1061 = shalt.err (!%p1058_p11)
}
  0x54   :  { %s1123_s2 = smov 256   ;;  %s1124_s26 = smov 16  }
  0x55   :  { %75 = dma.hbm_to_vmem [thread:$0]  %s1355_s4, 4096, %s70_s22, [#allocation9], %s1123_s2, %s1123_s2, %s1124_s26  }
  0x56   :  { %s1125_s24 = smov [#allocation11]   ;;  %s1062_s15 = scalar_lea.hbm %s1356_s5, 4096 }
  0x57   :  { %s81_s12 = sshll.u32 %s1125_s24, 4  ;;  %p1063_p12 = scmp.ne.s32.totalorder %s1356_s5, %s1062_s15  ;;  %s82_s12 = int_to_ptr.vmem [resolvable:$true] %s81_s12 }
  0x58   :  { %p1066_p13 = scmp.lt.u32.totalorder %s1062_s15, %s1356_s5 }
  0x5a   :  { %p1068_p0 = pnand %p1066_p13, %p1063_p12 }
  0x5c   :  { %1071 = shalt.err (!%p1068_p0)
}
  0x5d   :  { %s1072_s20 = scalar_lea.vmem %s82_s12, 4096  ;;  %p1077_p2 = scmp.lt.s32.totalorder %s82_s12, %s82_s12 }
  0x5e   :  { %p1073_p1 = scmp.ne.s32.totalorder %s82_s12, %s1072_s20  ;;  %p1078_p3 = scmp.lt.s32.totalorder %s1072_s20, %s1072_s20 }
  0x60   :  { %p1079_p4 = por %p1078_p3, %p1077_p2 }
  0x62   :  { %p1080_p5 = pnand %p1079_p4, %p1073_p1 }
  0x64   :  { %1083 = shalt.err (!%p1080_p5)
}
  0x65   :  { %87 = dma.hbm_to_vmem [thread:$0]  %s1356_s5, 4096, %s82_s12, [#allocation12], %s1118_s9, %s1118_s9, %s1119_s10  }
  0x66   :  { %1106 = dma.done.wait [#allocation3], 512  }
  0x67   :  { %1107 = vsyncadd [#allocation3], 4294966784 }
  0x68   :  { %1108 = dma.done.wait [#allocation6], 1280  }
  0x69   :  { %1109 = vsyncadd [#allocation6], 4294966016 }
  0x6a   :  { %1110 = dma.done.wait [#allocation9], 4608  }
  0x6b   :  { %1111 = vsyncadd [#allocation9], 4294962688 }
  0x6c   :  { %1112 = dma.done.wait [#allocation12], 4096  }
  0x6d   :  { %1113 = vsyncadd [#allocation12], 4294963200  ;;  %v1126_v0 = vmov 0.0   ;;  %v113_v1 = vld [vmem:[#allocation10 + $0x8] sm:$0xff]  ;;  %v115_v2 = vld [vmem:[#allocation10 + $0x18] sm:$0xff]  ;;  %vm269_vm0 = vcmask 130048  }
  0x6e   :  { %244 = vmatprep.mubr.f32.mxu0 %v1126_v0  ;;  %364 = vmatprep.mubr.f32.mxu1 %v1126_v0  ;;  %v112_v3 = vld [vmem:[#allocation10] sm:$0xff]  ;;  %v858_v4 = vpack.c.bf16 %v115_v2, %v113_v1  ;;  %v114_v5 = vld [vmem:[#allocation10 + $0x10] sm:$0xff]  ;;  %v117_v6 = vld [vmem:[#allocation10 + $0x28] sm:$0xff]  ;;  %s1127_s5 = smov [#allocation13]  }
  0x6f   :  { %v119_v7 = vld [vmem:[#allocation10 + $0x38] sm:$0xff]  ;;  %v860_v8 = vpack.c.bf16 %v114_v5, %v112_v3  ;;  %v116_v10 = vld [vmem:[#allocation10 + $0x20] sm:$0xff]  ;;  %v118_v11 = vld [vmem:[#allocation10 + $0x30] sm:$0xff]  ;;  %s783_s1 = sshll.u32 %s1127_s5, 4  ;;  %s784_s1 = int_to_ptr.vmem [resolvable:$true] %s783_s1 }
  0x70   :  { %v862_v9 = vpack.c.bf16 %v119_v7, %v117_v6  ;;  %v121_v12 = vld [vmem:[#allocation10 + $0x48] sm:$0xff]  ;;  %859 = vmatprep.subr.bf16.mxu0 %v858_v4  ;;  %v123_v13 = vld [vmem:[#allocation10 + $0x58] sm:$0xff]  ;;  %v864_v14 = vpack.c.bf16 %v118_v11, %v116_v10  ;;  %v120_v16 = vld [vmem:[#allocation10 + $0x40] sm:$0xff]  ;;  %s1084_s21 = scalar_lea.vmem %s784_s1, 512  ;;  %p1089_p7 = scmp.lt.s32.totalorder %s784_s1, %s784_s1 }
  0x71   :  { %861 = vmatpush1.bf16.msra.mxu0 %v860_v8  ;;  %v866_v15 = vpack.c.bf16 %v123_v13, %v121_v12  ;;  %v122_v17 = vld [vmem:[#allocation10 + $0x50] sm:$0xff]  ;;  %v125_v18 = vld [vmem:[#allocation10 + $0x68] sm:$0xff]  ;;  %v127_v19 = vld [vmem:[#allocation10 + $0x78] sm:$0xff]  ;;  %p1085_p6 = scmp.ne.s32.totalorder %s784_s1, %s1084_s21  ;;  %p1090_p8 = scmp.lt.s32.totalorder %s1084_s21, %s1084_s21 }
  0x72   :  { %863 = vmatprep.subr.bf16.mxu0 %v862_v9  ;;  %v868_v20 = vpack.c.bf16 %v122_v17, %v120_v16  ;;  %v870_v21 = vpack.c.bf16 %v127_v19, %v125_v18  ;;  %v124_v22 = vld [vmem:[#allocation10 + $0x60] sm:$0xff]  ;;  %v126_v23 = vld [vmem:[#allocation10 + $0x70] sm:$0xff]  ;;  %v129_v24 = vld [vmem:[#allocation10 + $0x88] sm:$0xff] }
  0x73   :  { %v131_v25 = vld [vmem:[#allocation10 + $0x98] sm:$0xff]  ;;  %v872_v26 = vpack.c.bf16 %v126_v23, %v124_v22  ;;  %v128_v28 = vld [vmem:[#allocation10 + $0x80] sm:$0xff]  ;;  %v130_v29 = vld [vmem:[#allocation10 + $0x90] sm:$0xff]  ;;  %p1091_p9 = por %p1090_p8, %p1089_p7 }
  0x74   :  { %v874_v27 = vpack.c.bf16 %v131_v25, %v129_v24  ;;  %v133_v30 = vld [vmem:[#allocation10 + $0xa8] sm:$0xff]  ;;  %v135_v31 = vld [vmem:[#allocation10 + $0xb8] sm:$0xff]  ;;  %v876_v32 = vpack.c.bf16 %v130_v29, %v128_v28  ;;  %v132_v34 = vld [vmem:[#allocation10 + $0xa0] sm:$0xff] }
  0x75   :  { %865 = vmatpush1.bf16.msra.mxu0 %v864_v14  ;;  %v878_v33 = vpack.c.bf16 %v135_v31, %v133_v30  ;;  %v134_v35 = vld [vmem:[#allocation10 + $0xb0] sm:$0xff]  ;;  %v137_v36 = vld [vmem:[#allocation10 + $0xc8] sm:$0xff]  ;;  %v139_v37 = vld [vmem:[#allocation10 + $0xd8] sm:$0xff]  ;;  %p1092_p10 = pnand %p1091_p9, %p1085_p6 }
  0x76   :  { %867 = vmatprep.subr.bf16.mxu0 %v866_v15  ;;  %v880_v38 = vpack.c.bf16 %v134_v35, %v132_v34  ;;  %v882_v39 = vpack.c.bf16 %v139_v37, %v137_v36  ;;  %v136_v40 = vld [vmem:[#allocation10 + $0xc0] sm:$0xff]  ;;  %v138_v41 = vld [vmem:[#allocation10 + $0xd0] sm:$0xff]  ;;  %v141_v42 = vld [vmem:[#allocation10 + $0xe8] sm:$0xff] }
  0x77   :  { %v143_v43 = vld [vmem:[#allocation10 + $0xf8] sm:$0xff]  ;;  %v884_v44 = vpack.c.bf16 %v138_v41, %v136_v40  ;;  %v140_v46 = vld [vmem:[#allocation10 + $0xe0] sm:$0xff]  ;;  %v142_v47 = vld [vmem:[#allocation10 + $0xf0] sm:$0xff] }
  0x78   :  { %v886_v45 = vpack.c.bf16 %v143_v43, %v141_v42  ;;  %v888_v48 = vpack.c.bf16 %v142_v47, %v140_v46  ;;  %v176_v49 = vld [vmem:[#allocation2] sm:$0xff]  ;;  %v177_v50 = vld [vmem:[#allocation2 + $0x8] sm:$0xff]  ;;  %v178_v51 = vld [vmem:[#allocation2 + $0x10] sm:$0xff] }
  0x79   :  { %869 = vmatpush1.bf16.msra.mxu0 %v868_v20  ;;  %v179_v52 = vld [vmem:[#allocation2 + $0x18] sm:$0xff]  ;;  %v1270_v59 = vld [vmem:[#allocation8] sm:$0xff]  ;;  %v1272_v60 = vld [vmem:[#allocation8 + $0x18] sm:$0xff] }
  0x7a   :  { %871 = vmatprep.subr.bf16.mxu0 %v870_v21  ;;  %v1279_v61 = vld [vmem:[#allocation8 + $0x8] sm:$0xff]  ;;  %v1285_v62 = vld [vmem:[#allocation8 + $0x10] sm:$0xff]  ;;  %v376_v12 = vld [vmem:[#allocation5 + $0x8] sm:$0xff] }
  0x7b   :  { %v385_v14 = vld [vmem:[#allocation5 + $0x18] sm:$0xff]  ;;  %v1290_v16 = vld [vmem:[#allocation7 + $0x8] sm:$0xff]  ;;  %v384_v20 = vld [vmem:[#allocation5 + $0x10] sm:$0xff] }
  0x7c   :  { %v375_v23 = vld [vmem:[#allocation5] sm:$0xff]  ;;  %v144_v41 = vld [vmem:[#allocation11] sm:$0xff]  ;;  %v145_v42 = vld [vmem:[#allocation11 + $0x8] sm:$0xff] }
  0x7d   :  { %873 = vmatpush1.bf16.msra.mxu0 %v872_v26  ;;  %v1292_v24 = vld [vmem:[#allocation7] sm:$0xff] }
  0x7e   :  { %875 = vmatprep.subr.bf16.mxu0 %v874_v27  ;;  %v162_v43 = vld [vmem:[#allocation11 + $0x90] sm:$0xff] }
  0x7f   :  { %v146_v47 = vld [vmem:[#allocation11 + $0x10] sm:$0xff] }
  0x81   :  { %877 = vmatpush1.bf16.msra.mxu0 %v876_v32 }
  0x82   :  { %879 = vmatprep.subr.bf16.mxu0 %v878_v33 }
  0x85   :  { %881 = vmatpush1.bf16.msra.mxu0 %v880_v38  ;;  %v160_v38 = vld [vmem:[#allocation11 + $0x80] sm:$0xff] }
  0x86   :  { %883 = vmatprep.subr.bf16.mxu0 %v882_v39  ;;  %v161_v39 = vld [vmem:[#allocation11 + $0x88] sm:$0xff] }
  0x87   :  { %v906_v40 = vpack.c.bf16 %v161_v39, %v160_v38 }
  0x89   :  { %885 = vmatpush1.bf16.msra.mxu0 %v884_v44  ;;  %v163_v44 = vld [vmem:[#allocation11 + $0x98] sm:$0xff] }
  0x8a   :  { %887 = vmatprep.subr.bf16.mxu0 %v886_v45  ;;  %v908_v45 = vpack.c.bf16 %v145_v42, %v144_v41  ;;  %v910_v46 = vpack.c.bf16 %v163_v44, %v162_v43 }
  0x8d   :  { %889 = vmatpush1.bf16.msra.mxu0 %v888_v48  ;;  %v147_v48 = vld [vmem:[#allocation11 + $0x18] sm:$0xff] }
  0x90   :  { %245 = vmatmul.mubr.f32.vlgmr.msra.gmra.mrb[0].mxu0 %v176_v49  ;;  %v164_v49 = vld [vmem:[#allocation11 + $0xa0] sm:$0xff] }
  0x91   :  { %250 = vmatprep.mubr.f32.mxu0 %v1126_v0 }
  0x94   :  { %251 = vmatmul.mubr.f32.gmra.mrb[2].mxu0 %v177_v50  ;;  %v165_v50 = vld [vmem:[#allocation11 + $0xa8] sm:$0xff] }
  0x95   :  { %256 = vmatprep.mubr.f32.mxu0 %v1126_v0 }
  0x98   :  { %257 = vmatmul.mubr.f32.gmra.mrb[4].mxu0 %v178_v51  ;;  %v912_v51 = vpack.c.bf16 %v147_v48, %v146_v47 }
  0x99   :  { %262 = vmatprep.mubr.f32.mxu0 %v1126_v0 }
  0x9c   :  { %263 = vmatmul.mubr.f32.gmra.mrb[6].mxu0 %v179_v52  ;;  %v914_v52 = vpack.c.bf16 %v165_v50, %v164_v49  ;;  %v579_v49 = vld [vmem:[#allocation5 + $0x20] sm:$0xff] }
  0x9d   :  { %346 = vmatprep.mubr.f32.mxu0 %v1126_v0 }
 0x163   :  { %v246_v53 = vpop.f32.mrb[0].mxu0 }
 0x164   :  { %v248_v54 = vpop.f32.mrb[1].mxu0 }
 0x167   :  { %v252_v55 = vpop.f32.mrb[2].mxu0 }
 0x168   :  { %v892_v56 = vpack.c.bf16 %v252_v55, %v246_v53  ;;  %v254_v57 = vpop.f32.mrb[3].mxu0  ;;  %v148_v53 = vld [vmem:[#allocation11 + $0x20] sm:$0xff]  ;;  %v166_v55 = vld [vmem:[#allocation11 + $0xb0] sm:$0xff] }
 0x169   :  { %v890_v58 = vpack.c.bf16 %v254_v57, %v248_v54  ;;  %v149_v54 = vld [vmem:[#allocation11 + $0x28] sm:$0xff] }
 0x16a   :  { %v916_v57 = vpack.c.bf16 %v149_v54, %v148_v53  ;;  %v589_v54 = vld [vmem:[#allocation5 + $0x38] sm:$0xff] }
 0x16b   :  { %891 = vmatprep.subr.bf16.mxu0 %v890_v58  ;;  %938 = vmatprep.subr.bf16.mxu1 %v890_v58  ;;  %v258_v63 = vpop.f32.mrb[4].mxu0 }
 0x16c   :  { %893 = vmatpush1.bf16.msra.mxu0 %v892_v56  ;;  %939 = vmatpush1.bf16.msra.mxu1 %v892_v56  ;;  %v260_v1 = vpop.f32.mrb[5].mxu0  ;;  %v167_v56 = vld [vmem:[#allocation11 + $0xb8] sm:$0xff] }
 0x16d   :  { %v918_v58 = vpack.c.bf16 %v167_v56, %v166_v55 }
 0x16f   :  { %798 = vmatmul.mubr.msk.f32.vlgmr.msra.gmra.mrb[8].mxu0 %vm269_vm0, %v1270_v59  ;;  %801 = vmatmul.mubr.msk.f32.vlgmr.msra.gmra.mrb[0].mxu1 %vm269_vm0, %v1272_v60  ;;  %v264_v2 = vpop.f32.mrb[6].mxu0 }
 0x170   :  { %352 = vmatprep.mubr.f32.mxu0 %v1126_v0  ;;  %456 = vmatprep.mubr.f32.mxu1 %v1126_v0  ;;  %v900_v3 = vpack.c.bf16 %v264_v2, %v258_v63  ;;  %v266_v4 = vpop.f32.mrb[7].mxu0  ;;  %v150_v63 = vld [vmem:[#allocation11 + $0x30] sm:$0xff]  ;;  %v168_v2 = vld [vmem:[#allocation11 + $0xc0] sm:$0xff] }
 0x171   :  { %v898_v5 = vpack.c.bf16 %v266_v4, %v260_v1  ;;  %v151_v1 = vld [vmem:[#allocation11 + $0x38] sm:$0xff] }
 0x172   :  { %v920_v4 = vpack.c.bf16 %v151_v1, %v150_v63 }
 0x173   :  { %799 = vmatmul.mubr.msk.f32.gmra.mrb[10].mxu0 %vm269_vm0, %v1279_v61 }
 0x174   :  { %358 = vmatprep.mubr.f32.mxu0 %v1126_v0 }
 0x177   :  { %800 = vmatmul.mubr.msk.f32.gmra.mrb[12].mxu0 %vm269_vm0, %v1285_v62 }
 0x178   :  { %660 = vmatprep.mubr.f32.mxu0 %v1126_v0 }
 0x242   :  { %v348_v6 = vpop.f32.mrb[8].mxu0  ;;  %v366_v7 = vpop.f32.mrb[0].mxu1 }
 0x243   :  { %v350_v8 = vpop.f32.mrb[9].mxu0  ;;  %v368_v9 = vpop.f32.mrb[1].mxu1 }
 0x246   :  { %v354_v10 = vpop.f32.mrb[10].mxu0 }
 0x247   :  { %v372_v11 = vsub.f32 %v354_v10, %v368_v9  ;;  %v356_v13 = vpop.f32.mrb[11].mxu0  ;;  %v171_v9 = vld [vmem:[#allocation11 + $0xd8] sm:$0xff] }
 0x248   :  { %v374_v15 = vadd.f32 %v366_v7, %v356_v13  ;;  %v153_v7 = vld [vmem:[#allocation11 + $0x48] sm:$0xff]  ;;  %v155_v13 = vld [vmem:[#allocation11 + $0x58] sm:$0xff] }
 0x249   :  { %v378_v17 = vsub.f32 %v376_v12, %v372_v11  ;;  %v154_v12 = vld [vmem:[#allocation11 + $0x50] sm:$0xff] }
 0x24a   :  { %v387_v18 = vsub.f32 %v385_v14, %v374_v15  ;;  %v360_v19 = vpop.f32.mrb[12].mxu0  ;;  %v928_v14 = vpack.c.bf16 %v155_v13, %v154_v12 }
 0x24b   :  { %v373_v21 = vadd.f32 %v360_v19, %v350_v8  ;;  %v362_v22 = vpop.f32.mrb[13].mxu0  ;;  %v380_v28 = vmul.f32 %v378_v17, %v1290_v16  ;;  %v170_v8 = vld [vmem:[#allocation11 + $0xd0] sm:$0xff]  ;;  %v173_v17 = vld [vmem:[#allocation11 + $0xe8] sm:$0xff] }
 0x24c   :  { %v371_v25 = vsub.f32 %v348_v6, %v362_v22  ;;  %v389_v26 = vmul.f32 %v387_v18, %v1290_v16  ;;  %v152_v6 = vld [vmem:[#allocation11 + $0x40] sm:$0xff]  ;;  %v174_v22 = vld [vmem:[#allocation11 + $0xf0] sm:$0xff] }
 0x24d   :  { %v386_v27 = vsub.f32 %v384_v20, %v373_v21  ;;  %v382_v34 = vadd.f32 %v380_v28, %v372_v11  ;;  %v924_v10 = vpack.c.bf16 %v153_v7, %v152_v6  ;;  %v926_v11 = vpack.c.bf16 %v171_v9, %v170_v8  ;;  %v156_v18 = vld [vmem:[#allocation11 + $0x60] sm:$0xff]  ;;  %v157_v20 = vld [vmem:[#allocation11 + $0x68] sm:$0xff] }
 0x24e   :  { %v377_v29 = vsub.f32 %v375_v23, %v371_v25  ;;  %v391_v32 = vadd.f32 %v389_v26, %v374_v15  ;;  %v172_v15 = vld [vmem:[#allocation11 + $0xe0] sm:$0xff]  ;;  %v175_v23 = vld [vmem:[#allocation11 + $0xf8] sm:$0xff]  ;;  %v158_v26 = vld [vmem:[#allocation11 + $0x70] sm:$0xff] }
 0x24f   :  { %v388_v30 = vmul.f32 %v386_v27, %v1292_v24  ;;  %v930_v19 = vpack.c.bf16 %v173_v17, %v172_v15  ;;  %v159_v27 = vld [vmem:[#allocation11 + $0x78] sm:$0xff] }
 0x250   :  { %v379_v31 = vmul.f32 %v377_v29, %v1292_v24  ;;  %v936_v28 = vpack.c.bf16 %v159_v27, %v158_v26 }
 0x251   :  { %v390_v33 = vadd.f32 %v388_v30, %v373_v21  ;;  %v932_v21 = vpack.c.bf16 %v157_v20, %v156_v18 }
 0x252   :  { %v381_v35 = vadd.f32 %v379_v31, %v371_v25  ;;  %v934_v25 = vpack.c.bf16 %v175_v23, %v174_v22 }
 0x253   :  { %v894_v36 = vpack.c.bf16 %v391_v32, %v390_v33 }
 0x254   :  { %v896_v37 = vpack.c.bf16 %v382_v34, %v381_v35 }
 0x255   :  { %895 = vmatprep.subr.bf16.mxu1 %v894_v36 }
 0x256   :  { %897 = vmatpush1.bf16.msra.mxu1 %v896_v37 }
 0x257   :  { %899 = vmatprep.subr.bf16.mxu1 %v898_v5 }
 0x259   :  { %802 = vmatmul.mubr.msk.f32.vlgmr.msra.gmra.mrb[2].mxu1 %vm269_vm0, %v1270_v59 }
 0x25a   :  { %901 = vmatpush1.bf16.msra.mxu1 %v900_v3  ;;  %462 = vmatprep.mubr.f32.mxu1 %v1126_v0  ;;  %v169_v3 = vld [vmem:[#allocation11 + $0xc8] sm:$0xff] }
 0x25b   :  { %907 = vmatprep.subr.bf16.mxu1 %v906_v40  ;;  %v922_v5 = vpack.c.bf16 %v169_v3, %v168_v2 }
 0x25d   :  { %803 = vmatmul.mubr.msk.f32.gmra.mrb[4].mxu1 %vm269_vm0, %v1279_v61 }
 0x25e   :  { %468 = vmatprep.mubr.f32.mxu1 %v1126_v0 }
 0x261   :  { %804 = vmatmul.mubr.msk.f32.gmra.mrb[6].mxu1 %vm269_vm0, %v1285_v62 }
 0x262   :  { %474 = vmatprep.mubr.f32.mxu1 %v1126_v0 }
 0x265   :  { %805 = vmatmul.mubr.msk.f32.gmra.mrb[8].mxu1 %vm269_vm0, %v1272_v60 }
 0x266   :  { %549 = vmatprep.mubr.f32.mxu1 %v1126_v0 }
 0x269   :  { %806 = vmatmul.mubr.msk.f32.vlgmr.msra.gmra.mrb[10].mxu1 %vm269_vm0, %v1270_v59 }
 0x26a   :  { %555 = vmatprep.mubr.f32.mxu1 %v1126_v0  ;;  %909 = vmatpush3.bf16.msra.mxu1 %v908_v45 }
 0x26b   :  { %911 = vmatprep.subr.bf16.mxu1 %v910_v46  ;;  %v588_v46 = vld [vmem:[#allocation5 + $0x30] sm:$0xff] }
 0x26d   :  { %807 = vmatmul.mubr.msk.f32.gmra.mrb[12].mxu1 %vm269_vm0, %v1279_v61 }
 0x26e   :  { %561 = vmatprep.mubr.f32.mxu1 %v1126_v0  ;;  %913 = vmatpush3.bf16.msra.mxu1 %v912_v51 }
 0x26f   :  { %915 = vmatprep.subr.bf16.mxu1 %v914_v52 }
 0x271   :  { %808 = vmatmul.mubr.msk.f32.gmra.mrb[14].mxu1 %vm269_vm0, %v1285_v62 }
 0x272   :  { %567 = vmatprep.mubr.f32.mxu1 %v1126_v0  ;;  %917 = vmatpush3.bf16.msra.mxu1 %v916_v57  ;;  %v580_v57 = vld [vmem:[#allocation5 + $0x28] sm:$0xff] }
 0x273   :  { %919 = vmatprep.subr.bf16.mxu1 %v918_v58 }
 0x275   :  { %809 = vmatmul.mubr.msk.f32.gmra.mrb[16].mxu1 %vm269_vm0, %v1272_v60 }
 0x276   :  { %921 = vmatpush3.bf16.msra.mxu1 %v920_v4 }
 0x277   :  { %923 = vmatprep.subr.bf16.mxu1 %v922_v5 }
 0x27a   :  { %925 = vmatpush3.bf16.msra.mxu1 %v924_v10 }
 0x27b   :  { %927 = vmatprep.subr.bf16.mxu1 %v926_v11 }
 0x27e   :  { %929 = vmatpush3.bf16.msra.mxu1 %v928_v14 }
 0x27f   :  { %931 = vmatprep.subr.bf16.mxu1 %v930_v19 }
 0x282   :  { %933 = vmatpush3.bf16.msra.mxu1 %v932_v21 }
 0x283   :  { %935 = vmatprep.subr.bf16.mxu1 %v934_v25 }
 0x286   :  { %937 = vmatpush3.bf16.msra.mxu1 %v936_v28 }
 0x32c   :  { %v458_v29 = vpop.f32.mrb[2].mxu1 }
 0x32d   :  { %v460_v30 = vpop.f32.mrb[3].mxu1 }
 0x330   :  { %v464_v31 = vpop.f32.mrb[4].mxu1 }
 0x331   :  { %v466_v32 = vpop.f32.mrb[5].mxu1 }
 0x334   :  { %v470_v33 = vpop.f32.mrb[6].mxu1 }
 0x335   :  { %v483_v34 = vsub.f32 %v460_v30, %v470_v33  ;;  %v472_v35 = vpop.f32.mrb[7].mxu1 }
 0x336   :  { %v481_v36 = vadd.f32 %v472_v35, %v458_v29 }
 0x337   :  { %753 = vmatprep.mubr.f32.mxu1 %v483_v34 }
 0x338   :  { %v476_v37 = vpop.f32.mrb[8].mxu1  ;;  %754 = vmatmul.mubr.f32.vlgmr.msra.gmra.mrb[18].mxu1 %v481_v36 }
 0x339   :  { %v484_v38 = vsub.f32 %v466_v32, %v476_v37  ;;  %v478_v39 = vpop.f32.mrb[9].mxu1 }
 0x33a   :  { %v482_v40 = vadd.f32 %v478_v39, %v464_v31 }
 0x33b   :  { %758 = vmatprep.mubr.f32.mxu1 %v484_v38 }
 0x33c   :  { %759 = vmatmul.mubr.f32.gmra.mrb[20].mxu1 %v482_v40  ;;  %v551_v41 = vpop.f32.mrb[10].mxu1 }
 0x33d   :  { %v553_v42 = vpop.f32.mrb[11].mxu1 }
 0x340   :  { %v557_v43 = vpop.f32.mrb[12].mxu1 }
 0x341   :  { %v559_v44 = vpop.f32.mrb[13].mxu1 }
 0x344   :  { %v563_v45 = vpop.f32.mrb[14].mxu1 }
 0x345   :  { %v576_v47 = vadd.f32 %v563_v45, %v553_v42  ;;  %v565_v48 = vpop.f32.mrb[15].mxu1 }
 0x346   :  { %v574_v50 = vsub.f32 %v551_v41, %v565_v48 }
 0x347   :  { %v590_v51 = vsub.f32 %v588_v46, %v576_v47 }
 0x348   :  { %v581_v52 = vsub.f32 %v579_v49, %v574_v50  ;;  %v569_v53 = vpop.f32.mrb[16].mxu1 }
 0x349   :  { %v577_v55 = vadd.f32 %v569_v53, %v559_v44  ;;  %v571_v56 = vpop.f32.mrb[17].mxu1  ;;  %v592_v63 = vmul.f32 %v590_v51, %v1292_v24 }
 0x34a   :  { %v575_v58 = vsub.f32 %v557_v43, %v571_v56  ;;  %v583_v2 = vmul.f32 %v581_v52, %v1292_v24 }
 0x34b   :  { %v591_v1 = vsub.f32 %v589_v54, %v577_v55  ;;  %v594_v6 = vadd.f32 %v592_v63, %v576_v47 }
 0x34c   :  { %v582_v3 = vsub.f32 %v580_v57, %v575_v58  ;;  %v585_v8 = vadd.f32 %v583_v2, %v574_v50 }
 0x34d   :  { %v593_v4 = vmul.f32 %v591_v1, %v1290_v16 }
 0x34e   :  { %v584_v5 = vmul.f32 %v582_v3, %v1290_v16 }
 0x34f   :  { %v595_v7 = vadd.f32 %v593_v4, %v577_v55 }
 0x350   :  { %v586_v9 = vadd.f32 %v584_v5, %v575_v58 }
 0x351   :  { %v902_v10 = vpack.c.bf16 %v595_v7, %v594_v6 }
 0x352   :  { %v904_v11 = vpack.c.bf16 %v586_v9, %v585_v8 }
 0x353   :  { %903 = vmatprep.subr.bf16.mxu0 %v902_v10 }
 0x354   :  { %905 = vmatpush1.bf16.msra.mxu0 %v904_v11 }
 0x357   :  { %810 = vmatmul.mubr.msk.f32.vlgmr.msra.gmra.mrb[14].mxu0 %vm269_vm0, %v1270_v59 }
 0x358   :  { %666 = vmatprep.mubr.f32.mxu0 %v1126_v0 }
 0x35b   :  { %811 = vmatmul.mubr.msk.f32.gmra.mrb[16].mxu0 %vm269_vm0, %v1279_v61 }
 0x35c   :  { %672 = vmatprep.mubr.f32.mxu0 %v1126_v0 }
 0x35f   :  { %812 = vmatmul.mubr.msk.f32.gmra.mrb[18].mxu0 %vm269_vm0, %v1285_v62 }
 0x360   :  { %678 = vmatprep.mubr.f32.mxu0 %v1126_v0 }
 0x363   :  { %813 = vmatmul.mubr.msk.f32.gmra.mrb[20].mxu0 %vm269_vm0, %v1272_v60 }
 0x40b   :  { %v846_v16 = vpop.f32.mrb[18].mxu1 }
 0x40c   :  { %v847_v24 = vpop.f32.mrb[19].mxu1 }
 0x40d   :  { %v848_v12 = vadd.f32 %v847_v24, %v846_v16 }
 0x40f   :  { %774 = vst [vmem:[#allocation13] sm:$0xff] %v848_v12  ;;  %v849_v59 = vpop.f32.mrb[20].mxu1 }
 0x410   :  { %v850_v13 = vpop.f32.mrb[21].mxu1 }
 0x411   :  { %v851_v14 = vadd.f32 %v850_v13, %v849_v59 }
 0x413   :  { %775 = vst [vmem:[#allocation13 + $0x8] sm:$0xff] %v851_v14 }
 0x42a   :  { %v662_v15 = vpop.f32.mrb[14].mxu0 }
 0x42b   :  { %v664_v61 = vpop.f32.mrb[15].mxu0 }
 0x42e   :  { %v668_v17 = vpop.f32.mrb[16].mxu0 }
 0x42f   :  { %v670_v18 = vpop.f32.mrb[17].mxu0 }
 0x432   :  { %v674_v19 = vpop.f32.mrb[18].mxu0 }
 0x433   :  { %v687_v20 = vsub.f32 %v664_v61, %v674_v19  ;;  %v676_v62 = vpop.f32.mrb[19].mxu0 }
 0x434   :  { %v685_v21 = vadd.f32 %v676_v62, %v662_v15 }
 0x435   :  { %763 = vmatprep.mubr.f32.mxu1 %v687_v20 }
 0x436   :  { %v680_v0 = vpop.f32.mrb[20].mxu0  ;;  %764 = vmatmul.mubr.f32.gmra.mrb[22].mxu1 %v685_v21 }
 0x437   :  { %v688_v60 = vsub.f32 %v670_v18, %v680_v0  ;;  %v682_v22 = vpop.f32.mrb[21].mxu0 }
 0x438   :  { %v686_v23 = vadd.f32 %v682_v22, %v668_v17 }
 0x439   :  { %768 = vmatprep.mubr.f32.mxu1 %v688_v60 }
 0x43a   :  { %769 = vmatmul.mubr.f32.gmra.mrb[24].mxu1 %v686_v23 }
 0x509   :  { %v852_v25 = vpop.f32.mrb[22].mxu1 }
 0x50a   :  { %v853_v26 = vpop.f32.mrb[23].mxu1 }
 0x50b   :  { %v854_v27 = vadd.f32 %v853_v26, %v852_v25 }
 0x50d   :  { %776 = vst [vmem:[#allocation13 + $0x10] sm:$0xff] %v854_v27  ;;  %v855_v28 = vpop.f32.mrb[24].mxu1 }
 0x50e   :  { %v856_v29 = vpop.f32.mrb[25].mxu1 }
 0x50f   :  { %v857_v30 = vadd.f32 %v856_v29, %v855_v28 }
 0x511   :  { %777 = vst [vmem:[#allocation13 + $0x18] sm:$0xff] %v857_v30 }
 0x512   :  { %1095 = shalt.err (!%p1092_p10)
}
 0x513   :  { %s1096_s25 = scalar_lea.hbm %s1357_s6, 512 }
 0x514   :  { %p1097_p11 = scmp.ne.s32.totalorder %s1357_s6, %s1096_s25  ;;  %p1100_p12 = scmp.lt.u32.totalorder %s1096_s25, %s1357_s6 }
 0x516   :  { %p1102_p13 = pnand %p1100_p12, %p1097_p11 }
 0x518   :  { %1105 = shalt.err (!%p1102_p13)
}
 0x519   :  { %789 = dma.vmem_to_hbm [thread:$0]  %s784_s1, 512, %s1357_s6, [#allocation4], %s1118_s9, %s1118_s9, %s1119_s10  }
 0x51a   :  { %1114 = dma.done.wait [#allocation4], 512  }
 0x51b   :  { %1115 = vsyncadd [#allocation4], 4294966784 }
 0x51c   :  { %793 = vsyncpa [#allocation3], 1 }
 0x51d   :  { %794 = vsyncpa [#allocation6], 1 }
 0x51e   :  { %795 = vsyncpa [#allocation9], 1 }
 0x51f   :  { %796 = vsyncpa [#allocation12], 1 }
 0x520   :  { %797 = vsyncpa [#allocation4], 1 }

</bundles_post_ra>
